<compile_context>
chip_gen: v5e
topology: v5e:2x2
jax: 0.10.0
libtpu: 0.0.40
codegen_flags: <defaults>
</compile_context>

<pallas_src>
import functools
import math

import jax
import jax.numpy as jnp
import numpy as np
from jax.experimental import pallas as pl
from jax.experimental.pallas import tpu as pltpu


def _round_up(v, m):
    return ((v + m - 1) // m) * m


def _pick_row_tile(n, target=512, min_tiles=2):
    """Largest multiple-of-8 divisor of n <= target, preferring >=min_tiles tiles."""
    cands = [t for t in range(8, min(n, target) + 1, 8) if n % t == 0]
    if not cands:
        return n                      # full-extent block is always legal
    pref = [t for t in cands if n // t >= min_tiles]
    return max(pref) if pref else max(cands)


def _pick_key_tile(ngp, target=512):
    """Largest multiple-of-128 divisor of ngp <= target (ngp is a 128-multiple)."""
    best, t = 128, 128
    while t <= min(ngp, target):
        if ngp % t == 0:
            best = t
        t += 128
    return best


_VMEM_BUDGET = 24 << 20   # conservative: fits v7x 64 MiB / v5e 16 MiB-scoped regimes


def _attn_vmem_bytes(tm, tk, c, icp):
    x_in = 2 * tm * c * 4                    # double-buffered f32 input
    out = 2 * tm * c * 4                     # double-buffered f32 output
    pg = 2 * tk * (2 * icp) * 2              # double-buffered bf16 phi|g tile
    wts = 2 * (2 * c * icp * 2 + (icp + c) * 4)
    scr = 2 * tm * icp * 4                   # theta + y accumulators
    f_tmp = tm * tk * 4                      # attention scores temporary
    return x_in + out + pg + wts + scr + f_tmp


def _pick_attn_tiles(n, ngp, c, icp):
    tk = _pick_key_tile(ngp)
    cands = [t for t in range(8, min(n, 512) + 1, 8) if n % t == 0] or [n]
    cands = sorted(cands, reverse=True)
    pref = [t for t in cands if n // t >= 2] or cands   # feed both v7x TCs
    for t in pref:
        if _attn_vmem_bytes(t, tk, c, icp) <= _VMEM_BUDGET:
            return t, tk
    return pref[-1], tk


# ---------------------------------------------------------------------------
# Kernel 1: fused phi/g 1x1 conv + window max-pool (1/N folded into g half).
# ---------------------------------------------------------------------------
def _proj_pool_kernel(x_ref, w_ref, b_ref, o_ref, *, win):
    w = w_ref[...]                                                # (c, 2*icp) bf16
    acc = jnp.dot(x_ref[0], w, preferred_element_type=jnp.float32)
    for q in range(1, win):                                       # static unroll
        acc = jnp.maximum(
            acc, jnp.dot(x_ref[q], w, preferred_element_type=jnp.float32))
    o_ref[...] = (acc + b_ref[...]).astype(o_ref.dtype)           # bf16 store


def phi_g_projection_pool(x_win, w_pg, b_pg, *, tng):
    b, win, ng0, c = x_win.shape
    k = w_pg.shape[1]
    return pl.pallas_call(
        functools.partial(_proj_pool_kernel, win=win),
        out_shape=jax.ShapeDtypeStruct((b, ng0, k), jnp.bfloat16),
        grid=(b, ng0 // tng),
        in_specs=[
            pl.BlockSpec((None, win, tng, c), lambda bi, ti: (bi, 0, ti, 0)),
            pl.BlockSpec((c, k), lambda bi, ti: (0, 0)),
            pl.BlockSpec((1, k), lambda bi, ti: (0, 0)),
        ],
        out_specs=pl.BlockSpec((None, tng, k), lambda bi, ti: (bi, ti, 0)),
        compiler_params=pltpu.CompilerParams(
            dimension_semantics=("parallel", "parallel"),
            vmem_limit_bytes=64 << 20),
    )(x_win, w_pg, b_pg)


# ---------------------------------------------------------------------------
# Kernel 2: theta projection + attention (key-tiled) + output conv(+BN) + residual.
# ---------------------------------------------------------------------------
def _attn_kernel(x_ref, wt_ref, bt_ref, pg_ref, wo_ref, bo_ref, o_ref,
                 theta_sc, acc_sc, *, icp):
    ki = pl.program_id(2)

    @pl.when(ki == 0)
    def _():
        theta_sc[...] = (
            jnp.dot(x_ref[...].astype(jnp.bfloat16), wt_ref[...],
                    preferred_element_type=jnp.float32) + bt_ref[...])
        acc_sc[...] = jnp.zeros_like(acc_sc)

    pg = pg_ref[...]                                   # (tk, 2*icp) bf16
    phi = pg[:, :icp]                                  # (tk, icp)
    g = pg[:, icp:]                                    # (tk, icp), 1/N pre-folded
    f = jax.lax.dot_general(                           # theta @ phi^T -> (tm, tk)
        theta_sc[...].astype(jnp.bfloat16), phi,
        dimension_numbers=(((1,), (1,)), ((), ())),
        preferred_element_type=jnp.float32)
    acc_sc[...] += jnp.dot(f.astype(jnp.bfloat16), g,
                           preferred_element_type=jnp.float32)     # (tm, icp)

    @pl.when(ki == pl.num_programs(2) - 1)
    def _():
        z = jnp.dot(acc_sc[...].astype(jnp.bfloat16), wo_ref[...],
                    preferred_element_type=jnp.float32)            # (tm, c)
        o_ref[...] = z + bo_ref[...] + x_ref[...]                  # residual


def nonlocal_attention(x3, w_theta, b_theta, pg, w_out, b_out, *, tm, tk):
    b, n, c = x3.shape
    icp = w_theta.shape[1]
    ngp = pg.shape[1]
    return pl.pallas_call(
        functools.partial(_attn_kernel, icp=icp),
        out_shape=jax.ShapeDtypeStruct((b, n, c), jnp.float32),
        grid=(b, n // tm, ngp // tk),
        in_specs=[
            pl.BlockSpec((None, tm, c), lambda bi, ti, ki: (bi, ti, 0)),
            pl.BlockSpec((c, icp), lambda bi, ti, ki: (0, 0)),
            pl.BlockSpec((1, icp), lambda bi, ti, ki: (0, 0)),
            pl.BlockSpec((None, tk, 2 * icp), lambda bi, ti, ki: (bi, ki, 0)),
            pl.BlockSpec((icp, c), lambda bi, ti, ki: (0, 0)),
            pl.BlockSpec((1, c), lambda bi, ti, ki: (0, 0)),
        ],
        out_specs=pl.BlockSpec((None, tm, c), lambda bi, ti, ki: (bi, ti, 0)),
        scratch_shapes=[
            pltpu.VMEM((tm, icp), jnp.float32),   # theta
            pltpu.VMEM((tm, icp), jnp.float32),   # y accumulator
        ],
        compiler_params=pltpu.CompilerParams(
            dimension_semantics=("parallel", "parallel", "arbitrary"),
            vmem_limit_bytes=64 << 20),
    )(x3, w_theta, b_theta, pg, w_out, b_out)


# ---------------------------------------------------------------------------
# Module wrapper (dimension=2 path of NonLocalBlockND, inference forward)
# ---------------------------------------------------------------------------
def _conv1x1_init(key, cin, cout):
    kw, kb = jax.random.split(key)
    bound = 1.0 / math.sqrt(cin)
    w = jax.random.uniform(kw, (cin, cout), jnp.float32, -bound, bound)
    b = jax.random.uniform(kb, (cout,), jnp.float32, -bound, bound)
    return w, b


class NonLocalBlock2DPallas:
    """NonLocalBlockND(dimension=2) forward pass on TPU via Pallas."""

    def __init__(self, in_channels, inter_channels=None, sub_sample=True,
                 bn_layer=True, downsample_stride=2, key=None):
        self.in_channels = in_channels
        self.inter_channels = (inter_channels if inter_channels is not None
                               else max(in_channels // 2, 1))
        self.sub_sample = sub_sample
        self.bn_layer = bn_layer
        self.downsample_stride = downsample_stride
        self.bn_eps = 1e-5

        if key is None:
            key = jax.random.PRNGKey(0)
        kg, kth, kph, kw = jax.random.split(key, 4)
        c, ic = in_channels, self.inter_channels
        self.w_g, self.b_g = _conv1x1_init(kg, c, ic)
        self.w_theta, self.b_theta = _conv1x1_init(kth, c, ic)
        self.w_phi, self.b_phi = _conv1x1_init(kph, c, ic)

        if bn_layer:
            self.w_w, self.b_w = _conv1x1_init(kw, ic, c)
            # torch: nn.init.constant_(W[1].weight, 0); constant_(W[1].bias, 0)
            self.bn_gamma = jnp.zeros((c,), jnp.float32)
            self.bn_beta = jnp.zeros((c,), jnp.float32)
            self.bn_mean = jnp.zeros((c,), jnp.float32)
            self.bn_var = jnp.ones((c,), jnp.float32)
        else:
            # torch zero-inits the bare output conv in this branch
            self.w_w = jnp.zeros((ic, c), jnp.float32)
            self.b_w = jnp.zeros((c,), jnp.float32)
            self.bn_gamma = self.bn_beta = self.bn_mean = self.bn_var = None

        self._jit_forward = jax.jit(self._forward)

    def _folded_output_conv(self):
        """Fold eval-mode BatchNorm into the output 1x1 conv (f32)."""
        if self.bn_layer:
            scale = self.bn_gamma * jax.lax.rsqrt(self.bn_var + self.bn_eps)
            w_out = self.w_w * scale[None, :]
            b_out = (self.b_w - self.bn_mean) * scale + self.bn_beta
        else:
            w_out, b_out = self.w_w, self.b_w
        return w_out, b_out

    def _forward(self, x):
        # x: (b, c, h, w) NCHW, PyTorch convention
        b, c, h, w = x.shape
        assert c == self.in_channels
        n = h * w
        ic = self.inter_channels
        ds = self.downsample_stride
        icp = _round_up(ic, 128)

        x_nhwc = jnp.transpose(x, (0, 2, 3, 1)).astype(jnp.float32)  # (b,h,w,c)
        x3 = x_nhwc.reshape(b, n, c)                                 # f32 (residual)

        if self.sub_sample:
            assert h % ds == 0 and w % ds == 0, "spatial dims must divide pool stride"
            # TODO(synk): torch MaxPool2d floors odd spatial dims; unsupported here.
            ng0 = (h // ds) * (w // ds)
            win = ds * ds
            xw = x_nhwc.astype(jnp.bfloat16).reshape(b, h // ds, ds, w // ds, ds, c)
            x_win = jnp.transpose(xw, (0, 2, 4, 1, 3, 5)).reshape(b, win, ng0, c)
        else:
            ng0, win = n, 1
            x_win = x3.astype(jnp.bfloat16).reshape(b, 1, n, c)
        inv_n = 1.0 / float(ng0)
        ngp = _round_up(ng0, 128)

        # ---- pad inter_channels to a full 128-lane multiple (exact) ----------
        def pad_cols(a, k):
            return jnp.pad(a, ((0, 0), (0, k - a.shape[1])))

        w_pg = jnp.concatenate(
            [pad_cols(self.w_phi, icp), pad_cols(self.w_g * inv_n, icp)],
            axis=1).astype(jnp.bfloat16)                            # (c, 2*icp)
        b_pg = jnp.concatenate(
            [jnp.pad(self.b_phi, (0, icp - ic)),
             jnp.pad(self.b_g * inv_n, (0, icp - ic))])[None, :].astype(jnp.float32)

        # ---- kernel 1: fused phi/g projection + max-pool, bf16 output --------
        tng = _pick_row_tile(ng0)
        pg = phi_g_projection_pool(x_win, w_pg, b_pg, tng=tng)      # (b, ng0, 2*icp)
        if ngp != ng0:
            pg = jnp.pad(pg, ((0, 0), (0, ngp - ng0), (0, 0)))      # zero keys: exact

        w_theta_p = pad_cols(self.w_theta, icp).astype(jnp.bfloat16)
        b_theta_p = jnp.pad(self.b_theta, (0, icp - ic))[None, :].astype(jnp.float32)

        w_out, b_out = self._folded_output_conv()
        w_out_p = jnp.pad(w_out, ((0, icp - ic), (0, 0))).astype(jnp.bfloat16)
        b_out_p = b_out.astype(jnp.float32)[None, :]

        # ---- kernel 2: fused theta + attention + output conv(+BN) + residual -
        tm, tk = _pick_attn_tiles(n, ngp, c, icp)
        z3 = nonlocal_attention(x3, w_theta_p, b_theta_p, pg, w_out_p, b_out_p,
                                tm=tm, tk=tk)
        return jnp.transpose(z3.reshape(b, h, w, c), (0, 3, 1, 2))

    def __call__(self, x):
        return self._jit_forward(x)


# ---------------------------------------------------------------------------
# Pure-JAX reference (mirrors the torch forward, f32 HIGHEST precision)
# ---------------------------------------------------------------------------
def reference_forward(m, x):
    b, c, h, w = x.shape
    ic = m.inter_channels
    hi = jax.lax.Precision.HIGHEST
    xf = jnp.transpose(x, (0, 2, 3, 1)).reshape(b, h * w, c).astype(jnp.float32)

    theta = jnp.einsum("bnc,ck->bnk", xf, m.w_theta, precision=hi) + m.b_theta
    phi = jnp.einsum("bnc,ck->bnk", xf, m.w_phi, precision=hi) + m.b_phi
    g = jnp.einsum("bnc,ck->bnk", xf, m.w_g, precision=hi) + m.b_g

    if m.sub_sample:
        ds = m.downsample_stride

        def pool(t):
            t = t.reshape(b, h // ds, ds, w // ds, ds, ic).max(axis=(2, 4))
            return t.reshape(b, -1, ic)

        phi, g = pool(phi), pool(g)

    ng = phi.shape[1]
    f = jnp.einsum("bnk,bmk->bnm", theta, phi, precision=hi) / ng
    y = jnp.einsum("bnm,bmk->bnk", f, g, precision=hi)

    if m.bn_layer:
        scale = m.bn_gamma / jnp.sqrt(m.bn_var + m.bn_eps)
        w_out = m.w_w * scale[None, :]
        b_out = (m.b_w - m.bn_mean) * scale + m.bn_beta
    else:
        w_out, b_out = m.w_w, m.b_w

    z = jnp.einsum("bnk,kc->bnc", y, w_out, precision=hi) + b_out + xf
    return jnp.transpose(z.reshape(b, h, w, c), (0, 3, 1, 2))


def _randomize_bn(model, key):
    """torch zero-inits the BN affine (=> z == x); give it non-trivial values so
    the full attention path is exercised.  Forward math is unchanged."""
    c = model.in_channels
    k1, k2, k3, k4 = jax.random.split(key, 4)
    model.bn_gamma = 1.0 + 0.1 * jax.random.normal(k1, (c,), jnp.float32)
    model.bn_beta = 0.1 * jax.random.normal(k2, (c,), jnp.float32)
    model.bn_mean = 0.1 * jax.random.normal(k3, (c,), jnp.float32)
    model.bn_var = jax.random.uniform(k4, (c,), jnp.float32, 0.5, 1.5)


# ---------------------------------------------------------------------------
if __name__ == "__main__":
    in_channels = 32
    root = jax.random.PRNGKey(0)
    kbn, kx, kbn2 = jax.random.split(root, 3)
    x = jax.random.normal(kx, (2, in_channels, 16, 16), jnp.float32)

    # Config 1: default (sub_sample=True, bn_layer=True)
    model = NonLocalBlock2DPallas(in_channels, key=jax.random.PRNGKey(0))
    _randomize_bn(model, kbn)
    z = jax.block_until_ready(model(x))
    z_ref = jax.block_until_ready(reference_forward(model, x))
    assert z.shape == x.shape
    np.testing.assert_allclose(np.asarray(z), np.asarray(z_ref), rtol=5e-2, atol=5e-2)

    # Config 2: no sub-sampling (exercises win=1 / no-Ng-pad path)
    model2 = NonLocalBlock2DPallas(in_channels, sub_sample=False,
                                   key=jax.random.PRNGKey(1))
    _randomize_bn(model2, kbn2)
    z2 = jax.block_until_ready(model2(x))
    z2_ref = jax.block_until_ready(reference_forward(model2, x))
    np.testing.assert_allclose(np.asarray(z2), np.asarray(z2_ref), rtol=5e-2, atol=5e-2)

    print("KERNEL_OK")
</pallas_src>

<mosaic_0001>
module attributes {stable_mosaic.version = 11 : i64} {
  func.func @_proj_pool_kernel(%arg0: i32, %arg1: i32, %arg2: memref<1x4x32x32xbf16, #tpu.memory_space<vmem>>, %arg3: memref<32x256xbf16, #tpu.memory_space<vmem>>, %arg4: memref<1x256xf32, #tpu.memory_space<vmem>>, %arg5: memref<1x32x256xbf16, #tpu.memory_space<vmem>>) attributes {dimension_semantics = [#tpu.dimension_semantics<parallel>, #tpu.dimension_semantics<parallel>], iteration_bounds = array<i64: 2, 2>, scalar_prefetch = 0 : i64, scratch_operands = 0 : i64, tpu.core_type = #tpu.core_type<tc>, window_params = [{transform_indices = @transform_0, window_bounds = array<i64: 1, 4, 32, 32>}, {pipeline_mode = #tpu.pipeline_mode<synchronous>, transform_indices = @transform_1, window_bounds = array<i64: 32, 256>}, {pipeline_mode = #tpu.pipeline_mode<synchronous>, transform_indices = @transform_2, window_bounds = array<i64: 1, 256>}, {transform_indices = @transform_3, window_bounds = array<i64: 1, 32, 256>}]} {
    %c0 = arith.constant 0 : index
    %c0_0 = arith.constant 0 : index
    %0 = vector.load %arg3[%c0, %c0_0] : memref<32x256xbf16, #tpu.memory_space<vmem>>, vector<32x256xbf16>
    %c0_1 = arith.constant 0 : index
    %c0_2 = arith.constant 0 : index
    %c0_3 = arith.constant 0 : index
    %c0_4 = arith.constant 0 : index
    %1 = vector.load %arg2[%c0_1, %c0_2, %c0_3, %c0_4] : memref<1x4x32x32xbf16, #tpu.memory_space<vmem>>, vector<1x1x32x32xbf16>
    %2 = vector.shape_cast %1 : vector<1x1x32x32xbf16> to vector<32x32xbf16>
    %cst = arith.constant dense<0.000000e+00> : vector<32x256xf32>
    %3 = tpu.matmul %2, %0, %cst {dimension_numbers = #tpu.dot_dimension_numbers<[1], [0], [0], [1], [0, 0, 1, 1], [], []>} : vector<32x32xbf16>, vector<32x256xbf16>, vector<32x256xf32> -> vector<32x256xf32>
    %c0_5 = arith.constant 0 : index
    %c1 = arith.constant 1 : index
    %c0_6 = arith.constant 0 : index
    %c0_7 = arith.constant 0 : index
    %4 = vector.load %arg2[%c0_5, %c1, %c0_6, %c0_7] : memref<1x4x32x32xbf16, #tpu.memory_space<vmem>>, vector<1x1x32x32xbf16>
    %5 = vector.shape_cast %4 : vector<1x1x32x32xbf16> to vector<32x32xbf16>
    %cst_8 = arith.constant dense<0.000000e+00> : vector<32x256xf32>
    %6 = tpu.matmul %5, %0, %cst_8 {dimension_numbers = #tpu.dot_dimension_numbers<[1], [0], [0], [1], [0, 0, 1, 1], [], []>} : vector<32x32xbf16>, vector<32x256xbf16>, vector<32x256xf32> -> vector<32x256xf32>
    %7 = arith.maximumf %3, %6 : vector<32x256xf32>
    %c0_9 = arith.constant 0 : index
    %c2 = arith.constant 2 : index
    %c0_10 = arith.constant 0 : index
    %c0_11 = arith.constant 0 : index
    %8 = vector.load %arg2[%c0_9, %c2, %c0_10, %c0_11] : memref<1x4x32x32xbf16, #tpu.memory_space<vmem>>, vector<1x1x32x32xbf16>
    %9 = vector.shape_cast %8 : vector<1x1x32x32xbf16> to vector<32x32xbf16>
    %cst_12 = arith.constant dense<0.000000e+00> : vector<32x256xf32>
    %10 = tpu.matmul %9, %0, %cst_12 {dimension_numbers = #tpu.dot_dimension_numbers<[1], [0], [0], [1], [0, 0, 1, 1], [], []>} : vector<32x32xbf16>, vector<32x256xbf16>, vector<32x256xf32> -> vector<32x256xf32>
    %11 = arith.maximumf %7, %10 : vector<32x256xf32>
    %c0_13 = arith.constant 0 : index
    %c3 = arith.constant 3 : index
    %c0_14 = arith.constant 0 : index
    %c0_15 = arith.constant 0 : index
    %12 = vector.load %arg2[%c0_13, %c3, %c0_14, %c0_15] : memref<1x4x32x32xbf16, #tpu.memory_space<vmem>>, vector<1x1x32x32xbf16>
    %13 = vector.shape_cast %12 : vector<1x1x32x32xbf16> to vector<32x32xbf16>
    %cst_16 = arith.constant dense<0.000000e+00> : vector<32x256xf32>
    %14 = tpu.matmul %13, %0, %cst_16 {dimension_numbers = #tpu.dot_dimension_numbers<[1], [0], [0], [1], [0, 0, 1, 1], [], []>} : vector<32x32xbf16>, vector<32x256xbf16>, vector<32x256xf32> -> vector<32x256xf32>
    %15 = arith.maximumf %11, %14 : vector<32x256xf32>
    %c0_17 = arith.constant 0 : index
    %c0_18 = arith.constant 0 : index
    %16 = vector.load %arg4[%c0_17, %c0_18] : memref<1x256xf32, #tpu.memory_space<vmem>>, vector<1x256xf32>
    %17 = vector.broadcast %16 : vector<1x256xf32> to vector<32x256xf32>
    %18 = arith.addf %15, %17 : vector<32x256xf32>
    %19 = arith.truncf %18 : vector<32x256xf32> to vector<32x256xbf16>
    %c0_19 = arith.constant 0 : index
    %c0_20 = arith.constant 0 : index
    %c0_21 = arith.constant 0 : index
    %20 = vector.load %arg5[%c0_19, %c0_20, %c0_21] : memref<1x32x256xbf16, #tpu.memory_space<vmem>>, vector<1x32x256xbf16>
    %21 = vector.shape_cast %20 : vector<1x32x256xbf16> to vector<32x256xbf16>
    %22 = vector.shape_cast %19 : vector<32x256xbf16> to vector<1x32x256xbf16>
    tpu.vector_store %arg5[%c0_19, %c0_20, %c0_21], %22 {strides = array<i32>} : memref<1x32x256xbf16, #tpu.memory_space<vmem>>, vector<1x32x256xbf16>,
    return
  }
  func.func @transform_0(%arg0: i32, %arg1: i32) -> (i32, i32, i32, i32) {
    %c0_i32 = arith.constant 0 : i32
    %c0_i32_0 = arith.constant 0 : i32
    %c0_i32_1 = arith.constant 0 : i32
    return %arg0, %c0_i32, %arg1, %c0_i32_0 : i32, i32, i32, i32
  }
  func.func @transform_1(%arg0: i32, %arg1: i32) -> (i32, i32) {
    %c0_i32 = arith.constant 0 : i32
    %c0_i32_0 = arith.constant 0 : i32
    %c0_i32_1 = arith.constant 0 : i32
    return %c0_i32, %c0_i32_0 : i32, i32
  }
  func.func @transform_2(%arg0: i32, %arg1: i32) -> (i32, i32) {
    %c0_i32 = arith.constant 0 : i32
    %c0_i32_0 = arith.constant 0 : i32
    %c0_i32_1 = arith.constant 0 : i32
    return %c0_i32, %c0_i32_0 : i32, i32
  }
  func.func @transform_3(%arg0: i32, %arg1: i32) -> (i32, i32, i32) {
    %c0_i32 = arith.constant 0 : i32
    %c0_i32_0 = arith.constant 0 : i32
    return %arg0, %arg1, %c0_i32 : i32, i32, i32
  }
}

module attributes {stable_mosaic.version = 11 : i64} {
  func.func @_attn_kernel(%arg0: i32, %arg1: i32, %arg2: i32, %arg3: memref<1x128x32xf32, #tpu.memory_space<vmem>>, %arg4: memref<32x128xbf16, #tpu.memory_space<vmem>>, %arg5: memref<1x128xf32, #tpu.memory_space<vmem>>, %arg6: memref<1x128x256xbf16, #tpu.memory_space<vmem>>, %arg7: memref<128x32xbf16, #tpu.memory_space<vmem>>, %arg8: memref<1x32xf32, #tpu.memory_space<vmem>>, %arg9: memref<1x128x32xf32, #tpu.memory_space<vmem>>, %arg10: memref<128x128xf32, #tpu.memory_space<vmem>>, %arg11: memref<128x128xf32, #tpu.memory_space<vmem>>) attributes {dimension_semantics = [#tpu.dimension_semantics<parallel>, #tpu.dimension_semantics<parallel>, #tpu.dimension_semantics<arbitrary>], iteration_bounds = array<i64: 2, 2, 1>, scalar_prefetch = 0 : i64, scratch_operands = 2 : i64, tpu.core_type = #tpu.core_type<tc>, window_params = [{transform_indices = @transform_0, window_bounds = array<i64: 1, 128, 32>}, {pipeline_mode = #tpu.pipeline_mode<synchronous>, transform_indices = @transform_1, window_bounds = array<i64: 32, 128>}, {pipeline_mode = #tpu.pipeline_mode<synchronous>, transform_indices = @transform_2, window_bounds = array<i64: 1, 128>}, {transform_indices = @transform_3, window_bounds = array<i64: 1, 128, 256>}, {pipeline_mode = #tpu.pipeline_mode<synchronous>, transform_indices = @transform_4, window_bounds = array<i64: 128, 32>}, {pipeline_mode = #tpu.pipeline_mode<synchronous>, transform_indices = @transform_5, window_bounds = array<i64: 1, 32>}, {transform_indices = @transform_6, window_bounds = array<i64: 1, 128, 32>}]} {
    %c0_i32 = arith.constant 0 : i32
    %0 = arith.cmpi eq, %arg2, %c0_i32 : i32
    %1 = arith.extui %0 : i1 to i32
    %c0_i32_0 = arith.constant 0 : i32
    %2 = arith.cmpi ne, %1, %c0_i32_0 : i32
    scf.if %2 {
      %c0_12 = arith.constant 0 : index
      %c0_13 = arith.constant 0 : index
      %c0_14 = arith.constant 0 : index
      %18 = vector.load %arg3[%c0_12, %c0_13, %c0_14] : memref<1x128x32xf32, #tpu.memory_space<vmem>>, vector<1x128x32xf32>
      %19 = vector.shape_cast %18 : vector<1x128x32xf32> to vector<128x32xf32>
      %20 = arith.truncf %19 : vector<128x32xf32> to vector<128x32xbf16>
      %c0_15 = arith.constant 0 : index
      %c0_16 = arith.constant 0 : index
      %21 = vector.load %arg4[%c0_15, %c0_16] : memref<32x128xbf16, #tpu.memory_space<vmem>>, vector<32x128xbf16>
      %cst_17 = arith.constant dense<0.000000e+00> : vector<128x128xf32>
      %22 = tpu.matmul %20, %21, %cst_17 {dimension_numbers = #tpu.dot_dimension_numbers<[1], [0], [0], [1], [0, 0, 1, 1], [], []>} : vector<128x32xbf16>, vector<32x128xbf16>, vector<128x128xf32> -> vector<128x128xf32>
      %c0_18 = arith.constant 0 : index
      %c0_19 = arith.constant 0 : index
      %23 = vector.load %arg5[%c0_18, %c0_19] : memref<1x128xf32, #tpu.memory_space<vmem>>, vector<1x128xf32>
      %24 = vector.broadcast %23 : vector<1x128xf32> to vector<128x128xf32>
      %25 = arith.addf %22, %24 : vector<128x128xf32>
      %c0_20 = arith.constant 0 : index
      %c0_21 = arith.constant 0 : index
      %26 = vector.load %arg10[%c0_20, %c0_21] : memref<128x128xf32, #tpu.memory_space<vmem>>, vector<128x128xf32>
      tpu.vector_store %arg10[%c0_20, %c0_21], %25 {strides = array<i32>} : memref<128x128xf32, #tpu.memory_space<vmem>>, vector<128x128xf32>,
      %cst_22 = arith.constant 0.000000e+00 : f32
      %27 = vector.broadcast %cst_22 : f32 to vector<128x128xf32>
      %c0_23 = arith.constant 0 : index
      %c0_24 = arith.constant 0 : index
      %28 = vector.load %arg11[%c0_23, %c0_24] : memref<128x128xf32, #tpu.memory_space<vmem>>, vector<128x128xf32>
      tpu.vector_store %arg11[%c0_23, %c0_24], %27 {strides = array<i32>} : memref<128x128xf32, #tpu.memory_space<vmem>>, vector<128x128xf32>,
    } else {
    }
    %c0 = arith.constant 0 : index
    %c0_1 = arith.constant 0 : index
    %c0_2 = arith.constant 0 : index
    %3 = vector.load %arg6[%c0, %c0_1, %c0_2] : memref<1x128x256xbf16, #tpu.memory_space<vmem>>, vector<1x128x256xbf16>
    %4 = vector.shape_cast %3 : vector<1x128x256xbf16> to vector<128x256xbf16>
    %5 = vector.extract_strided_slice %4 {offsets = [0, 0], sizes = [128, 128], strides = [1, 1]} : vector<128x256xbf16> to vector<128x128xbf16>
    %6 = vector.extract_strided_slice %4 {offsets = [0, 128], sizes = [128, 128], strides = [1, 1]} : vector<128x256xbf16> to vector<128x128xbf16>
    %c0_3 = arith.constant 0 : index
    %c0_4 = arith.constant 0 : index
    %7 = vector.load %arg10[%c0_3, %c0_4] : memref<128x128xf32, #tpu.memory_space<vmem>>, vector<128x128xf32>
    %8 = arith.truncf %7 : vector<128x128xf32> to vector<128x128xbf16>
    %cst = arith.constant dense<0.000000e+00> : vector<128x128xf32>
    %9 = tpu.matmul %8, %5, %cst {dimension_numbers = #tpu.dot_dimension_numbers<[1], [1], [0], [0], [0, 0, 1, 0], [], []>} : vector<128x128xbf16>, vector<128x128xbf16>, vector<128x128xf32> -> vector<128x128xf32>
    %c0_5 = arith.constant 0 : index
    %c0_6 = arith.constant 0 : index
    %10 = vector.load %arg11[%c0_5, %c0_6] : memref<128x128xf32, #tpu.memory_space<vmem>>, vector<128x128xf32>
    %11 = arith.truncf %9 : vector<128x128xf32> to vector<128x128xbf16>
    %cst_7 = arith.constant dense<0.000000e+00> : vector<128x128xf32>
    %12 = tpu.matmul %11, %6, %cst_7 {dimension_numbers = #tpu.dot_dimension_numbers<[1], [0], [0], [1], [0, 0, 1, 1], [], []>} : vector<128x128xbf16>, vector<128x128xbf16>, vector<128x128xf32> -> vector<128x128xf32>
    %13 = arith.addf %10, %12 : vector<128x128xf32>
    %c0_8 = arith.constant 0 : index
    %c0_9 = arith.constant 0 : index
    %14 = vector.load %arg11[%c0_8, %c0_9] : memref<128x128xf32, #tpu.memory_space<vmem>>, vector<128x128xf32>
    tpu.vector_store %arg11[%c0_8, %c0_9], %13 {strides = array<i32>} : memref<128x128xf32, #tpu.memory_space<vmem>>, vector<128x128xf32>,
    %c0_i32_10 = arith.constant 0 : i32
    %15 = arith.cmpi eq, %arg2, %c0_i32_10 : i32
    %16 = arith.extui %15 : i1 to i32
    %c0_i32_11 = arith.constant 0 : i32
    %17 = arith.cmpi ne, %16, %c0_i32_11 : i32
    scf.if %17 {
      %c0_12 = arith.constant 0 : index
      %c0_13 = arith.constant 0 : index
      %18 = vector.load %arg11[%c0_12, %c0_13] : memref<128x128xf32, #tpu.memory_space<vmem>>, vector<128x128xf32>
      %19 = arith.truncf %18 : vector<128x128xf32> to vector<128x128xbf16>
      %c0_14 = arith.constant 0 : index
      %c0_15 = arith.constant 0 : index
      %20 = vector.load %arg7[%c0_14, %c0_15] : memref<128x32xbf16, #tpu.memory_space<vmem>>, vector<128x32xbf16>
      %cst_16 = arith.constant dense<0.000000e+00> : vector<128x32xf32>
      %21 = tpu.matmul %19, %20, %cst_16 {dimension_numbers = #tpu.dot_dimension_numbers<[1], [0], [0], [1], [0, 0, 1, 1], [], []>} : vector<128x128xbf16>, vector<128x32xbf16>, vector<128x32xf32> -> vector<128x32xf32>
      %c0_17 = arith.constant 0 : index
      %c0_18 = arith.constant 0 : index
      %22 = vector.load %arg8[%c0_17, %c0_18] : memref<1x32xf32, #tpu.memory_space<vmem>>, vector<1x32xf32>
      %23 = vector.broadcast %22 : vector<1x32xf32> to vector<128x32xf32>
      %24 = arith.addf %21, %23 : vector<128x32xf32>
      %c0_19 = arith.constant 0 : index
      %c0_20 = arith.constant 0 : index
      %c0_21 = arith.constant 0 : index
      %25 = vector.load %arg3[%c0_19, %c0_20, %c0_21] : memref<1x128x32xf32, #tpu.memory_space<vmem>>, vector<1x128x32xf32>
      %26 = vector.shape_cast %25 : vector<1x128x32xf32> to vector<128x32xf32>
      %27 = arith.addf %24, %26 : vector<128x32xf32>
      %c0_22 = arith.constant 0 : index
      %c0_23 = arith.constant 0 : index
      %c0_24 = arith.constant 0 : index
      %28 = vector.load %arg9[%c0_22, %c0_23, %c0_24] : memref<1x128x32xf32, #tpu.memory_space<vmem>>, vector<1x128x32xf32>
      %29 = vector.shape_cast %28 : vector<1x128x32xf32> to vector<128x32xf32>
      %30 = vector.shape_cast %27 : vector<128x32xf32> to vector<1x128x32xf32>
      tpu.vector_store %arg9[%c0_22, %c0_23, %c0_24], %30 {strides = array<i32>} : memref<1x128x32xf32, #tpu.memory_space<vmem>>, vector<1x128x32xf32>,
    } else {
    }
    return
  }
  func.func @transform_0(%arg0: i32, %arg1: i32, %arg2: i32) -> (i32, i32, i32) {
    %c0_i32 = arith.constant 0 : i32
    %c0_i32_0 = arith.constant 0 : i32
    return %arg0, %arg1, %c0_i32 : i32, i32, i32
  }
  func.func @transform_1(%arg0: i32, %arg1: i32, %arg2: i32) -> (i32, i32) {
    %c0_i32 = arith.constant 0 : i32
    %c0_i32_0 = arith.constant 0 : i32
    %c0_i32_1 = arith.constant 0 : i32
    return %c0_i32, %c0_i32_0 : i32, i32
  }
  func.func @transform_2(%arg0: i32, %arg1: i32, %arg2: i32) -> (i32, i32) {
    %c0_i32 = arith.constant 0 : i32
    %c0_i32_0 = arith.constant 0 : i32
    %c0_i32_1 = arith.constant 0 : i32
    return %c0_i32, %c0_i32_0 : i32, i32
  }
  func.func @transform_3(%arg0: i32, %arg1: i32, %arg2: i32) -> (i32, i32, i32) {
    %c0_i32 = arith.constant 0 : i32
    %c0_i32_0 = arith.constant 0 : i32
    return %arg0, %arg2, %c0_i32 : i32, i32, i32
  }
  func.func @transform_4(%arg0: i32, %arg1: i32, %arg2: i32) -> (i32, i32) {
    %c0_i32 = arith.constant 0 : i32
    %c0_i32_0 = arith.constant 0 : i32
    %c0_i32_1 = arith.constant 0 : i32
    return %c0_i32, %c0_i32_0 : i32, i32
  }
  func.func @transform_5(%arg0: i32, %arg1: i32, %arg2: i32) -> (i32, i32) {
    %c0_i32 = arith.constant 0 : i32
    %c0_i32_0 = arith.constant 0 : i32
    %c0_i32_1 = arith.constant 0 : i32
    return %c0_i32, %c0_i32_0 : i32, i32
  }
  func.func @transform_6(%arg0: i32, %arg1: i32, %arg2: i32) -> (i32, i32, i32) {
    %c0_i32 = arith.constant 0 : i32
    %c0_i32_0 = arith.constant 0 : i32
    return %arg0, %arg1, %c0_i32 : i32, i32, i32
  }
}

</mosaic_0001>

<bundles_post_ra>
// kernel: _forward.2
= control target key start
LH: loop header
LB: loop body
LE: loop exit
PB: predicated region body
PF: predicated region fallthrough
CT: control target
= control target key end

     0   :  { %s947_s12 = smov 0   ;;  %s949_s13 = smov 0   ;;  %s1099_s0 = inlined_call_operand.vmem [shape: bf16[2,4,64,32], index: 0, kind: input, shape index: {}]   ;;  %s1100_s1 = inlined_call_operand.vmem [shape: bf16[32,256], index: 1, kind: input, shape index: {}]   ;;  %s1101_s2 = inlined_call_operand.vmem [shape: f32[1,256], index: 2, kind: input, shape index: {}]   ;;  %s1102_s3 = inlined_call_operand.vmem [shape: bf16[2,64,256], index: 3, kind: output, shape index: {}]  }
   0x1   :  { %s951_s14 = smov 0   ;;  %s953_s15 = smov 0  }
   0x2   :  { %s955_s16 = smov 0   ;;  %s957_s17 = smov 0  }
   0x3   :  { %s959_s18 = smov 0  }
   0x4 LB: > { %s22_s19 = sadd.s32 1, %s917_s16  ;;  %s25_s20 = sadd.s32 1, %s921_s17  ;;  %s925_s18 = sphi %s959_s18, %s13_s18   ;;  %s921_s17 = sphi %s957_s17, %s1108_s17   ;;  %s917_s16 = sphi %s955_s16, %s1107_s16   ;;  %s913_s15 = sphi %s953_s15, %s1106_s15   ;;  %s909_s14 = sphi %s951_s14, %s1105_s14   ;;  %s905_s13 = sphi %s949_s13, %s1104_s13   ;;  %s901_s12 = sphi %s947_s12, %s1103_s12  }
   0x5   : > { %p23_p0 = scmp.ge.s32.totalorder %s22_s19, 2  ;;  %p41_p1 = scmp.ne.s32.totalorder %s905_s13, %s901_s12 }
   0x6   : > { %p42_p2 = scmp.eq.s32.totalorder %s925_s18, 0  ;;  %s34_s24 = sadd.s32 1, %s905_s13 }
   0x7   : > { %s1110_s19 = smov (%p23_p0, %s22_s19), 0  ;;  %s1112_s20 = smov (!%p23_p0, %s25_s20), %s921_s17 }
   0x8   : > { %p43_p3 = por %p42_p2, %p41_p1  ;;  %p27_p4 = scmp.ge.s32.totalorder %s1112_s20, 2 }
   0x9   : > { %s30_s21 = ssub.s32 %s917_s16, %s1110_s19  ;;  %p714_p6 = scmp.ge.s32.totalorder %s925_s18, 4 }
   0xa   : > { %s1114_s20 = smov (%p27_p4, %s1112_s20), 0 }
   0xb   : > { %s29_s22 = ssub.s32 %s921_s17, %s1114_s20  ;;  %143 = sbr.rel (%p714_p6) target bundleno = 31 (0x1f), region = 24 }
   0xc   : > { %s31_s23 = sor.u32 %s30_s21, %s29_s22 }
   0xd   : > { %p32_p5 = scmp.eq.s32.totalorder %s31_s23, 0 }
   0xf   : > { %s998_s25 = scalar_select %p32_p5, %s905_s13, %s34_s24  }
  0x10   : > { %146 = sbr.rel (!%p43_p3) target bundleno = 31 (0x1f), region = 28  ;;  %s148_s26 = sand.u32 (%p43_p3), 1, %s905_s13  }
  0x11   : > { %s716_s27 = sshll.u32 (%p43_p3), %s917_s16, 2  ;;  %s715_s28 = sshll.u32 (%p43_p3), %s148_s26, 6 }
  0x12   : > { %s717_s29 = sshll.u32 (%p43_p3), %s921_s17, 5  ;;  %s150_s8 = scalar_lea.vmem (%p43_p3), [#allocation2], %s715_s28 }
  0x13   : > { %s153_s30 = sadd.s32 (%p43_p3), %s717_s29, %s716_s27 }
  0x14   : > { %s718_s4 = sshll.u32 (%p43_p3), %s153_s30, 2 }
  0x15   : > { %s155_s7 = scalar_lea.vmem %s1099_s0, %s718_s4 }
  0x16   : > { %v172_v0 = vld [vmem:[%s155_s7] sm:$0xff]   ;;  %v176_v1 = vld [vmem:[%s155_s7 + $0x8] sm:$0xff]  }
  0x17   : > { %v180_v2 = vld [vmem:[%s155_s7 + $0x20] sm:$0xff]   ;;  %173 = vst [vmem:[%s150_s8] sm:$0xff] %v172_v0   ;;  %v184_v3 = vld [vmem:[%s155_s7 + $0x28] sm:$0xff]  }
  0x18   : > { %177 = vst [vmem:[%s150_s8 + $0x8] sm:$0xff] %v176_v1   ;;  %v188_v4 = vld [vmem:[%s155_s7 + $0x40] sm:$0xff]   ;;  %v192_v5 = vld [vmem:[%s155_s7 + $0x48] sm:$0xff]  }
  0x19   : > { %181 = vst [vmem:[%s150_s8 + $0x10] sm:$0xff] %v180_v2   ;;  %v196_v6 = vld [vmem:[%s155_s7 + $0x60] sm:$0xff]   ;;  %v200_v7 = vld [vmem:[%s155_s7 + $0x68] sm:$0xff]  }
  0x1a   : > { %185 = vst [vmem:[%s150_s8 + $0x18] sm:$0xff] %v184_v3  }
  0x1b   : > { %189 = vst [vmem:[%s150_s8 + $0x20] sm:$0xff] %v188_v4  }
  0x1c   : > { %193 = vst [vmem:[%s150_s8 + $0x28] sm:$0xff] %v192_v5  }
  0x1d   : > { %197 = vst [vmem:[%s150_s8 + $0x30] sm:$0xff] %v196_v6  }
  0x1e   : > { %201 = vst [vmem:[%s150_s8 + $0x38] sm:$0xff] %v200_v7  }
  0x1f PF: > { %p719_p7 = scmp.ge.s32.totalorder %s925_s18, 1  ;;  %p258_p8 = scmp.lt.s32.totalorder %s925_s18, 5 }
  0x21   : > { %p259_p9 = pnand %p719_p7, %p258_p8 }
  0x22   : > { %s265_s8 = sand.u32 (!%p259_p9), 1, %s901_s12   ;;  %s721_s12 = sshll.u32 (!%p259_p9), %s909_s14, 2 }
  0x23   : > { %262 = sbr.rel (%p259_p9) target bundleno = 248 (0xf8), region = 69  ;;  %s720_s9 = sshll.u32 (!%p259_p9), %s265_s8, 6 }
  0x24   : > { %s1034_s10 = scalar_lea.vmem (!%p259_p9), [#allocation2], %s720_s9  ;;  %p295_p10 = scmp.lt.s32.totalorder (!%p259_p9), %s913_s15, 1 }
  0x25   : > { %p297_p11 = scmp.lt.s32.totalorder (!%p259_p9), %s721_s12, 7 }
  0x28   : > { %v743_v8 = vld [vmem:[%s1100_s1 + $0x10] sm:$0xf]  ;;  %v806_v9 = vld [vmem:[%s1100_s1 + $0x14] sm:$0xf0]  ;;  %v805_v10 = vld [vmem:[%s1100_s1 + $0x14] sm:$0xf] }
  0x29   : > { %v744_v11 = vor.u32 %v806_v9, %v743_v8  ;;  %v745_v12 = vld [vmem:[%s1100_s1 + $0x18] sm:$0xf0]  ;;  %v735_v13 = vld [vmem:[%s1100_s1] sm:$0xf]  ;;  %v804_v14 = vld [vmem:[%s1100_s1 + $0x4] sm:$0xf0] }
  0x2a   : > { %v748_v15 = vor.u32 %v805_v10, %v745_v12  ;;  %v803_v16 = vld [vmem:[%s1100_s1 + $0x4] sm:$0xf]  ;;  %v737_v17 = vld [vmem:[%s1100_s1 + $0x8] sm:$0xf0]  ;;  %v736_v18 = vor.u32 %v804_v14, %v735_v13  ;;  %v809_v21 = vld [vmem:[%s1034_s10 + $0x10] sm:$0xff]  ;;  %vm344_vm0 = vcmask 261120  }
  0x2b   : > { %357 = vmatpush.bf16.msra.mxu0 %v744_v11  ;;  %416 = vmatpush.bf16.msra.mxu2 %v744_v11  ;;  %v740_v19 = vor.u32 %v803_v16, %v737_v17  ;;  %v807_v20 = vld [vmem:[%s1034_s10] sm:$0xff]  ;;  %v808_v22 = vld [vmem:[%s1034_s10 + $0x8] sm:$0xff]  ;;  %v810_v23 = vld [vmem:[%s1034_s10 + $0x18] sm:$0xff]  ;;  %s1116_s15 = smov (!%p295_p10, %s913_s15), 1  ;;  %s1118_s12 = smov (!%p297_p11, %s721_s12), 7 }
  0x2c   : > { %376 = vmatpush.bf16.msra.mxu1 %v748_v15  ;;  %435 = vmatpush.bf16.msra.mxu3 %v748_v15  ;;  %v811_v24 = vld [vmem:[%s1034_s10 + $0x20] sm:$0xff]  ;;  %v813_v25 = vld [vmem:[%s1034_s10 + $0x30] sm:$0xff]  ;;  %v812_v26 = vld [vmem:[%s1034_s10 + $0x28] sm:$0xff]  ;;  %s722_s22 = sshll.u32 %s1118_s12, 1  ;;  %s723_s23 = sshll.u32 %s1116_s15, 4 }
  0x2d   : > { %v814_v27 = vld [vmem:[%s1034_s10 + $0x38] sm:$0xff]  ;;  %v590_v46 = vld [vmem:[%s1101_s2] sm:$0x3]  ;;  %s301_s14 = sadd.s32 %s723_s23, %s722_s22 }
  0x2e   : > { %v592_v50 = vperm.slane %v590_v46, 0  ;;  %v593_v53 = vperm.slane %v590_v46, 1  ;;  %s724_s24 = sshll.u32 %s301_s14, 2 }
  0x2f   : > { %358 = vmatpush.bf16.msra.mxu0 %v736_v18  ;;  %417 = vmatpush.bf16.msra.mxu2 %v736_v18  ;;  %s1071_s15 = scalar_lea.vmem %s1102_s3, %s724_s24 }
  0x30   : > { %377 = vmatpush.bf16.msra.mxu1 %v740_v19  ;;  %436 = vmatpush.bf16.msra.mxu3 %v740_v19 }
  0x32   : > { %749 = vmatmul.msk.bf16.vlgmr.msra.gmra.mxu0 %vm344_vm0, %v807_v20  ;;  %765 = vmatmul.msk.bf16.vlgmr.msra.gmra.mxu2 %vm344_vm0, %v809_v21 }
  0x33   : > { %550 = vmatpush.bf16.msrb.mxu2 %v744_v11  ;;  %751 = vmatmul.msk.bf16.vlgmr.msra.gmra.mxu1 %vm344_vm0, %v807_v20 }
  0x34   : > { %569 = vmatpush.bf16.msrb.mxu3 %v748_v15  ;;  %483 = vmatpush.bf16.msrb.mxu0 %v744_v11 }
  0x35   : > { %767 = vmatmul.msk.bf16.vlgmr.msra.gmra.mxu3 %vm344_vm0, %v809_v21  ;;  %502 = vmatpush.bf16.msrb.mxu1 %v748_v15 }
  0x37   : > { %551 = vmatpush.bf16.msrb.mxu2 %v736_v18 }
  0x38   : > { %570 = vmatpush.bf16.msrb.mxu3 %v740_v19  ;;  %484 = vmatpush.bf16.msrb.mxu0 %v736_v18 }
  0x39   : > { %503 = vmatpush.bf16.msrb.mxu1 %v740_v19 }
  0x42   : > { %750 = vmatmul.msk.bf16.gmra.mxu0 %vm344_vm0, %v808_v22  ;;  %766 = vmatmul.msk.bf16.gmra.mxu2 %vm344_vm0, %v810_v23 }
  0x43   : > { %752 = vmatmul.msk.bf16.gmra.mxu1 %vm344_vm0, %v808_v22 }
  0x45   : > { %768 = vmatmul.msk.bf16.gmra.mxu3 %vm344_vm0, %v810_v23 }
  0x52   : > { %781 = vmatmul.msk.bf16.vlgmr.msrb.gmra.mxu0 %vm344_vm0, %v811_v24  ;;  %797 = vmatmul.msk.bf16.vlgmr.msrb.gmra.mxu2 %vm344_vm0, %v813_v25 }
  0x53   : > { %783 = vmatmul.msk.bf16.vlgmr.msrb.gmra.mxu1 %vm344_vm0, %v811_v24 }
  0x55   : > { %799 = vmatmul.msk.bf16.vlgmr.msrb.gmra.mxu3 %vm344_vm0, %v813_v25 }
  0x62   : > { %782 = vmatmul.msk.bf16.gmra.mxu0 %vm344_vm0, %v812_v26  ;;  %798 = vmatmul.msk.bf16.gmra.mxu2 %vm344_vm0, %v814_v27 }
  0x63   : > { %784 = vmatmul.msk.bf16.gmra.mxu1 %vm344_vm0, %v812_v26 }
  0x65   : > { %800 = vmatmul.msk.bf16.gmra.mxu3 %vm344_vm0, %v814_v27 }
  0xaf   : > { %v360_v28 = vpop.f32.mrf.mxu0 }
  0xb0   : > { %v379_v29 = vpop.f32.mrf.mxu1 }
  0xb5   : > { %v419_v30 = vpop.f32.mrf.mxu2 }
  0xb6   : > { %v448_v47 = vmax.f32 %v360_v28, %v419_v30 }
  0xb7   : > { %v362_v32 = vpop.f32.mrf.mxu0 }
  0xb8   : > { %v438_v31 = vpop.f32.mrf.mxu3  ;;  %v381_v33 = vpop.f32.mrf.mxu1 }
  0xb9   : > { %v449_v48 = vmax.f32 %v379_v29, %v438_v31 }
  0xbd   : > { %v421_v34 = vpop.f32.mrf.mxu2 }
  0xbe   : > { %v450_v61 = vmax.f32 %v362_v32, %v421_v34 }
  0xbf   : > { %v365_v36 = vpop.f32.mrf.mxu0 }
  0xc0   : > { %v440_v35 = vpop.f32.mrf.mxu3  ;;  %v384_v37 = vpop.f32.mrf.mxu1 }
  0xc1   : > { %v451_v62 = vmax.f32 %v381_v33, %v440_v35 }
  0xc5   : > { %v424_v38 = vpop.f32.mrf.mxu2 }
  0xc6   : > { %v452_v10 = vmax.f32 %v365_v36, %v424_v38 }
  0xc7   : > { %v367_v40 = vpop.f32.mrf.mxu0 }
  0xc8   : > { %v443_v39 = vpop.f32.mrf.mxu3  ;;  %v1061_v41 = vpop.f32.mrf.mxu1 }
  0xc9   : > { %v453_v11 = vmax.f32 %v384_v37, %v443_v39 }
  0xcd   : > { %v426_v42 = vpop.f32.mrf.mxu2 }
  0xce   : > { %v454_v22 = vmax.f32 %v367_v40, %v426_v42 }
  0xcf   : > { %v486_v44 = vpop.f32.mrf.mxu0 }
  0xd0   : > { %v445_v43 = vpop.f32.mrf.mxu3  ;;  %v505_v45 = vpop.f32.mrf.mxu1  ;;  %v515_v49 = vmax.f32 %v448_v47, %v486_v44 }
  0xd1   : > { %v516_v51 = vmax.f32 %v449_v48, %v505_v45  ;;  %v455_v24 = vmax.f32 %v1061_v41, %v445_v43 }
  0xd5   : > { %v553_v52 = vpop.f32.mrf.mxu2 }
  0xd6   : > { %v582_v54 = vmax.f32 %v515_v49, %v553_v52 }
  0xd7   : > { %v488_v57 = vpop.f32.mrf.mxu0 }
  0xd8   : > { %v572_v55 = vpop.f32.mrf.mxu3  ;;  %v596_v58 = vadd.f32 %v592_v50, %v582_v54  ;;  %v507_v59 = vpop.f32.mrf.mxu1  ;;  %v517_v0 = vmax.f32 %v450_v61, %v488_v57 }
  0xd9   : > { %v583_v56 = vmax.f32 %v516_v51, %v572_v55  ;;  %v518_v1 = vmax.f32 %v451_v62, %v507_v59 }
  0xdb   : > { %v597_v60 = vadd.f32 %v593_v53, %v583_v56 }
  0xdd   : > { %v604_v63 = vpack.c.bf16 %v597_v60, %v596_v58  ;;  %v555_v2 = vpop.f32.mrf.mxu2 }
  0xde   : > { %v584_v3 = vmax.f32 %v517_v0, %v555_v2 }
  0xdf   : > { %608 = vst [vmem:[%s1071_s15] sm:$0xff] %v604_v63  ;;  %v491_v6 = vpop.f32.mrf.mxu0 }
  0xe0   : > { %v574_v4 = vpop.f32.mrf.mxu3  ;;  %v598_v7 = vadd.f32 %v592_v50, %v584_v3  ;;  %v510_v8 = vpop.f32.mrf.mxu1  ;;  %v519_v13 = vmax.f32 %v452_v10, %v491_v6 }
  0xe1   : > { %v585_v5 = vmax.f32 %v518_v1, %v574_v4  ;;  %v520_v14 = vmax.f32 %v453_v11, %v510_v8 }
  0xe3   : > { %v599_v9 = vadd.f32 %v593_v53, %v585_v5 }
  0xe5   : > { %v605_v12 = vpack.c.bf16 %v599_v9, %v598_v7  ;;  %v558_v15 = vpop.f32.mrf.mxu2 }
  0xe6   : > { %v586_v16 = vmax.f32 %v519_v13, %v558_v15 }
  0xe7   : > { %609 = vst [vmem:[%s1071_s15 + $0x8] sm:$0xff] %v605_v12  ;;  %v493_v21 = vpop.f32.mrf.mxu0 }
  0xe8   : > { %v577_v17 = vpop.f32.mrf.mxu3  ;;  %v600_v19 = vadd.f32 %v592_v50, %v586_v16  ;;  %v512_v23 = vpop.f32.mrf.mxu1  ;;  %v521_v26 = vmax.f32 %v454_v22, %v493_v21 }
  0xe9   : > { %v587_v18 = vmax.f32 %v520_v14, %v577_v17  ;;  %v522_v27 = vmax.f32 %v455_v24, %v512_v23 }
  0xeb   : > { %v601_v20 = vadd.f32 %v593_v53, %v587_v18 }
  0xed   : > { %v606_v25 = vpack.c.bf16 %v601_v20, %v600_v19  ;;  %v560_v28 = vpop.f32.mrf.mxu2 }
  0xee   : > { %v588_v29 = vmax.f32 %v521_v26, %v560_v28 }
  0xef   : > { %610 = vst [vmem:[%s1071_s15 + $0x10] sm:$0xff] %v606_v25 }
  0xf0   : > { %v579_v30 = vpop.f32.mrf.mxu3  ;;  %v602_v32 = vadd.f32 %v592_v50, %v588_v29 }
  0xf1   : > { %v589_v31 = vmax.f32 %v522_v27, %v579_v30 }
  0xf3   : > { %v603_v33 = vadd.f32 %v593_v53, %v589_v31 }
  0xf5   : > { %v607_v34 = vpack.c.bf16 %v603_v33, %v602_v32 }
  0xf7   : > { %611 = vst [vmem:[%s1071_s15 + $0x18] sm:$0xff] %v607_v34 }
  0xf8 PF: > { %s13_s18 = sadd.s32 1, %s925_s18   ;;  %s1103_s12 = smov %s905_s13 }
  0xf9   : > { %p10_p12 = scmp.ge.s32.totalorder %s13_s18, 6   ;;  %s1104_s13 = smov %s998_s25 }
  0xfa   : > { %s1105_s14 = smov %s917_s16  ;;  %s1106_s15 = smov %s921_s17 }
  0xfb   : > { %s1107_s16 = smov %s1110_s19  ;;  %s1108_s17 = smov %s1114_s20 }
  0xfc   :  { %12 = sbr.rel (!%p10_p12) target bundleno = 4 (0x4), region = 111 }

// kernel: _forward.3
= control target key start
LH: loop header
LB: loop body
LE: loop exit
PB: predicated region body
PF: predicated region fallthrough
CT: control target
= control target key end

     0   :  { %11 = vsyncpa [#allocation5], 0  ;;  %s1808_s0 = inlined_call_operand.vmem [shape: f32[2,256,32], index: 0, kind: input, shape index: {}]   ;;  %s1809_s1 = inlined_call_operand.vmem [shape: bf16[32,128], index: 1, kind: input, shape index: {}]   ;;  %s1810_s2 = inlined_call_operand.vmem [shape: f32[1,128], index: 2, kind: input, shape index: {}]   ;;  %s1811_s3 = inlined_call_operand.vmem [shape: bf16[2,128,256], index: 3, kind: input, shape index: {}]   ;;  %s1812_s4 = inlined_call_operand.vmem [shape: bf16[128,32], index: 4, kind: input, shape index: {}]   ;;  %s1813_s5 = inlined_call_operand.vmem [shape: f32[1,32], index: 5, kind: input, shape index: {}]   ;;  %s1814_s6 = inlined_call_operand.hbm [shape: f32[2,256,32], index: 6, kind: output, shape index: {}]  }
   0x1   :  { %13 = vsyncpa [#allocation5 + $0x1], 0  ;;  %s1445_s21 = smov 0   ;;  %s1447_s22 = smov 0  }
   0x2   :  { %s1449_s23 = smov 0   ;;  %s1451_s24 = smov 0  }
   0x3   :  { %s1453_s25 = smov 0   ;;  %s1455_s26 = smov 0  }
   0x4   :  { %s1457_s27 = smov 0   ;;  %s1459_s28 = smov 0  }
   0x5 LB: > { %s1073_s29 = sadd.s32 4294967295, %s1406_s28   ;;  %s1074_s30 = sadd.s32 4294967294, %s1406_s28   ;;  %s1406_s28 = sphi %s1459_s28, %s19_s28   ;;  %s1402_s27 = sphi %s1457_s27, %s1823_s27   ;;  %s1398_s26 = sphi %s1455_s26, %s1822_s26   ;;  %s1394_s25 = sphi %s1453_s25, %s1821_s25   ;;  %s1390_s24 = sphi %s1451_s24, %s1820_s24   ;;  %s1386_s23 = sphi %s1449_s23, %s1819_s23   ;;  %s1382_s22 = sphi %s1447_s22, %s1818_s22   ;;  %s1378_s21 = sphi %s1445_s21, %s1817_s21  }
   0x6   : > { %s34_s7 = sadd.s32 1, %s1398_s26  ;;  %s38_s8 = sadd.s32 1, %s1402_s27 }
   0x7   : > { %p36_p0 = scmp.ge.s32.totalorder %s34_s7, 2  ;;  %p197_p1 = scmp.ne.s32.totalorder %s1386_s23, %s1382_s22 }
   0x8   : > { %p198_p2 = scmp.eq.s32.totalorder %s1073_s29, 3  ;;  %p203_p5 = scmp.ne.s32.totalorder %s1382_s22, %s1378_s21 }
   0x9   : > { %s1825_s7 = smov (%p36_p0, %s34_s7), 0  ;;  %s1827_s8 = smov (!%p36_p0, %s38_s8), %s1402_s27 }
   0xa   : > { %s183_s9 = ssub.s32 %s1398_s26, %s1825_s7  ;;  %p1496_p3 = por %p198_p2, %p197_p1 }
   0xb   : > { %p40_p4 = scmp.ge.s32.totalorder %s1827_s8, 2  ;;  %p204_p6 = scmp.eq.s32.totalorder %s1074_s30, 3 }
   0xc   : > { %p1077_p7 = scmp.ge.s32.totalorder %s1406_s28, 1  ;;  %p261_p9 = scmp.lt.s32.totalorder %s1406_s28, 5 }
   0xd   : > { %s1829_s8 = smov (%p40_p4, %s1827_s8), 0  ;;  %p1505_p8 = por %p204_p6, %p203_p5 }
   0xe   : > { %s182_s12 = ssub.s32 %s1402_s27, %s1829_s8  ;;  %s187_s13 = sadd.s32 1, %s1386_s23 }
   0xf   : > { %s184_s14 = sor.u32 %s183_s9, %s182_s12  ;;  %p262_p10 = pnand %p1077_p7, %p261_p9 }
  0x10   : > { %p185_p11 = scmp.eq.s32.totalorder %s184_s14, 0  ;;  %s1520_s18 = sshll.u32 (!%p262_p10), %s1390_s24, 4 }
  0x11   : > { %265 = sbr.rel (%p262_p10) target bundleno = 708 (0x2c4), region = 44  ;;  %p306_p12 = scmp.lt.s32.totalorder (!%p262_p10), %s1394_s25, 1 }
  0x12   : > { %s1514_s15 = scalar_select %p185_p11, %s1386_s23, %s187_s13  }
  0x13   : > { %p308_p13 = scmp.lt.s32.totalorder (!%p262_p10), %s1520_s18, 31 }
  0x16   : > { %v1204_v0 = vld [vmem:[%s1809_s1 + $0x8] sm:$0xff]  ;;  %v1203_v1 = vld [vmem:[%s1809_s1] sm:$0xff]  ;;  %s307_s29 = scalar_select %p306_p12, %s1394_s25, 1  ;;  %vm376_vm0 = vcmask 261120  }
  0x17   : > { %407 = vmatpush.bf16.msra.mxu0 %v1204_v0  ;;  %s309_s30 = scalar_select %p308_p13, %s1520_s18, 31  ;;  %v1630_v51 = vld [vmem:[%s1810_s2] ss:$0 sm:$0xff] }
  0x18   : > { %s1080_s9 = sshll.u32 %s307_s29, 5  ;;  %s1202_s12 = sshll.u32 %s307_s29, 7 }
  0x19   : > { %s311_s13 = sadd.s32 %s1080_s9, %s309_s30  ;;  %s1532_s17 = scalar_lea.vmem %s1811_s3, %s1202_s12 }
  0x1a   : > { %s1081_s24 = sshll.u32 %s311_s13, 3  ;;  %v1130_v2 = vld [vmem:[%s1532_s17 + $0x70] sm:$0xf]  ;;  %v1220_v3 = vld [vmem:[%s1532_s17 + $0x74] sm:$0xf0]  ;;  %s1198_s9 = sshll.u32 %s1394_s25, 5 }
  0x1b   : > { %408 = vmatpush.bf16.msra.mxu0 %v1203_v1  ;;  %s1539_s29 = scalar_lea.vmem %s1808_s0, %s1081_s24  ;;  %v1131_v4 = vor.u32 %v1220_v3, %v1130_v2  ;;  %v1126_v8 = vld [vmem:[%s1532_s17 + $0x60] sm:$0xf]  ;;  %v1218_v9 = vld [vmem:[%s1532_s17 + $0x64] sm:$0xf0]  ;;  %v1122_v11 = vld [vmem:[%s1532_s17 + $0x50] sm:$0xf]  ;;  %s961_s12 = sadd.s32 %s1198_s9, %s1520_s18 }
  0x1c   : > { %v1542_v5 = vld [vmem:[%s1539_s29] sm:$0xff]  ;;  %v1545_v6 = vld [vmem:[%s1539_s29 + $0x8] sm:$0xff]  ;;  %v1127_v10 = vor.u32 %v1218_v9, %v1126_v8  ;;  %v1216_v12 = vld [vmem:[%s1532_s17 + $0x54] sm:$0xf0]  ;;  %s302_s24 = sand.u32 1, %s1382_s22   ;;  %s1199_s13 = sshll.u32 %s961_s12, 3 }
  0x1d   : > { %v348_v7 = vpack.c.bf16 %v1545_v6, %v1542_v5  ;;  %1229 = vmatpush.bf16.xpose.msra.mxu1 %v1131_v4  ;;  %v1555_v13 = vld [vmem:[%s1539_s29 + $0x10] sm:$0xff]  ;;  %v1558_v14 = vld [vmem:[%s1539_s29 + $0x18] sm:$0xff]  ;;  %v1123_v15 = vor.u32 %v1216_v12, %v1122_v11  ;;  %v1118_v17 = vld [vmem:[%s1532_s17 + $0x40] sm:$0xf]  ;;  %s950_s18 = scalar_lea.sflag [#allocation5], %s302_s24 }
  0x1e   : > { %v349_v16 = vpack.c.bf16 %v1558_v14, %v1555_v13  ;;  %v1214_v18 = vld [vmem:[%s1532_s17 + $0x44] sm:$0xf0]  ;;  %v1566_v20 = vld [vmem:[%s1539_s29 + $0x20] sm:$0xff]  ;;  %v1114_v23 = vld [vmem:[%s1532_s17 + $0x30] sm:$0xf] }
  0x1f   : > { %570 = vmatpush.bf16.xpose.msrb.mxu0 %v1131_v4  ;;  %v1119_v19 = vor.u32 %v1214_v18, %v1118_v17  ;;  %v1569_v21 = vld [vmem:[%s1539_s29 + $0x28] sm:$0xff]  ;;  %v1212_v24 = vld [vmem:[%s1532_s17 + $0x34] sm:$0xf0]  ;;  %v1577_v26 = vld [vmem:[%s1539_s29 + $0x30] sm:$0xff] }
  0x20   : > { %1092 = vmatmul.msk.bf16.vlgmr.msra.gmra.mxu0 %vm376_vm0, %v348_v7  ;;  %v350_v22 = vpack.c.bf16 %v1569_v21, %v1566_v20  ;;  %v1115_v25 = vor.u32 %v1212_v24, %v1114_v23  ;;  %v1580_v27 = vld [vmem:[%s1539_s29 + $0x38] sm:$0xff]  ;;  %v1110_v29 = vld [vmem:[%s1532_s17 + $0x20] sm:$0xf]  ;;  %v1210_v30 = vld [vmem:[%s1532_s17 + $0x24] sm:$0xf0] }
  0x21   : > { %v351_v28 = vpack.c.bf16 %v1580_v27, %v1577_v26  ;;  %v1111_v31 = vor.u32 %v1210_v30, %v1110_v29  ;;  %v1588_v32 = vld [vmem:[%s1539_s29 + $0x40] sm:$0xff]  ;;  %v1591_v33 = vld [vmem:[%s1539_s29 + $0x48] sm:$0xff]  ;;  %v1106_v35 = vld [vmem:[%s1532_s17 + $0x10] sm:$0xf] }
  0x22   : > { %v352_v34 = vpack.c.bf16 %v1591_v33, %v1588_v32  ;;  %v1208_v36 = vld [vmem:[%s1532_s17 + $0x14] sm:$0xf0]  ;;  %v1599_v38 = vld [vmem:[%s1539_s29 + $0x50] sm:$0xff]  ;;  %v1102_v41 = vld [vmem:[%s1532_s17] sm:$0xf] }
  0x23   : > { %v1107_v37 = vor.u32 %v1208_v36, %v1106_v35  ;;  %v1602_v39 = vld [vmem:[%s1539_s29 + $0x58] sm:$0xff]  ;;  %v1206_v42 = vld [vmem:[%s1532_s17 + $0x4] sm:$0xf0]  ;;  %v1610_v44 = vld [vmem:[%s1539_s29 + $0x60] sm:$0xff] }
  0x24   : > { %v353_v40 = vpack.c.bf16 %v1602_v39, %v1599_v38  ;;  %v1103_v43 = vor.u32 %v1206_v42, %v1102_v41  ;;  %v1613_v45 = vld [vmem:[%s1539_s29 + $0x68] sm:$0xff]  ;;  %v1619_v47 = vld [vmem:[%s1539_s29 + $0x70] sm:$0xff]  ;;  %v1622_v48 = vld [vmem:[%s1539_s29 + $0x78] sm:$0xff]  ;;  %s1078_s29 = sshll.u32 %s302_s24, 7 }
  0x25   : > { %1230 = vmatpush.bf16.xpose.msra.mxu1 %v1127_v10  ;;  %v354_v46 = vpack.c.bf16 %v1613_v45, %v1610_v44  ;;  %v355_v49 = vpack.c.bf16 %v1622_v48, %v1619_v47  ;;  %v1219_v17 = vld [vmem:[%s1532_s17 + $0x74] sm:$0xf]  ;;  %v1160_v18 = vld [vmem:[%s1532_s17 + $0x78] sm:$0xf0]  ;;  %v1156_v23 = vld [vmem:[%s1532_s17 + $0x68] sm:$0xf0] }
  0x26   : > { %v1213_v36 = vld [vmem:[%s1532_s17 + $0x44] sm:$0xf]  ;;  %v1211_v41 = vld [vmem:[%s1532_s17 + $0x34] sm:$0xf]  ;;  %v1144_v42 = vld [vmem:[%s1532_s17 + $0x38] sm:$0xf0] }
  0x27   : > { %571 = vmatpush.bf16.xpose.msrb.mxu0 %v1127_v10  ;;  %s1698_s30 = scalar_lea.vmem [#allocation4], %s1078_s29 }
  0x28   : > { %s964_s19 = sshll.u32 %s1698_s30, 4  ;;  %s965_s19 = int_to_ptr.vmem [resolvable:$true] %s964_s19 }
  0x2d   : > { %1231 = vmatpush.bf16.xpose.msra.mxu1 %v1123_v15 }
  0x2f   : > { %572 = vmatpush.bf16.xpose.msrb.mxu0 %v1123_v15 }
  0x30   : > { %1093 = vmatmul.msk.bf16.gmra.mxu0 %vm376_vm0, %v349_v16 }
  0x35   : > { %1232 = vmatpush.bf16.xpose.msra.mxu1 %v1119_v19 }
  0x37   : > { %573 = vmatpush.bf16.xpose.msrb.mxu0 %v1119_v19  ;;  %v1163_v19 = vor.u32 %v1219_v17, %v1160_v18 }
  0x39   : > { %675 = vmatpush.bf16.msra.mxu2 %v1163_v19 }
  0x3d   : > { %1233 = vmatpush.bf16.xpose.msra.mxu1 %v1115_v25 }
  0x3f   : > { %574 = vmatpush.bf16.xpose.msrb.mxu0 %v1115_v25 }
  0x40   : > { %1094 = vmatmul.msk.bf16.gmra.mxu0 %vm376_vm0, %v350_v22  ;;  %v1217_v22 = vld [vmem:[%s1532_s17 + $0x64] sm:$0xf] }
  0x41   : > { %v1159_v25 = vor.u32 %v1217_v22, %v1156_v23 }
  0x43   : > { %676 = vmatpush.bf16.msra.mxu2 %v1159_v25 }
  0x45   : > { %1234 = vmatpush.bf16.xpose.msra.mxu1 %v1111_v31 }
  0x47   : > { %575 = vmatpush.bf16.xpose.msrb.mxu0 %v1111_v31  ;;  %v1215_v31 = vld [vmem:[%s1532_s17 + $0x54] sm:$0xf] }
  0x4d   : > { %1235 = vmatpush.bf16.xpose.msra.mxu1 %v1107_v37 }
  0x4f   : > { %576 = vmatpush.bf16.xpose.msrb.mxu0 %v1107_v37  ;;  %v1148_v37 = vld [vmem:[%s1532_s17 + $0x48] sm:$0xf0] }
  0x50   : > { %1095 = vmatmul.msk.bf16.gmra.mxu0 %vm376_vm0, %v351_v28 }
  0x55   : > { %1236 = vmatpush.bf16.xpose.msra.mxu1 %v1103_v43 }
  0x57   : > { %577 = vmatpush.bf16.xpose.msrb.mxu0 %v1103_v43 }
  0x60   : > { %1096 = vmatmul.msk.bf16.gmra.mxu0 %vm376_vm0, %v352_v34  ;;  %v1152_v34 = vld [vmem:[%s1532_s17 + $0x58] sm:$0xf0] }
  0x61   : > { %v1155_v35 = vor.u32 %v1215_v31, %v1152_v34  ;;  %v1226_v31 = vld [vmem:[%s1812_s4 + $0x28] sm:$0xff] }
  0x63   : > { %677 = vmatpush.bf16.msra.mxu2 %v1155_v35  ;;  %v1225_v35 = vld [vmem:[%s1812_s4 + $0x20] sm:$0xff] }
  0x70   : > { %1097 = vmatmul.msk.bf16.gmra.mxu0 %vm376_vm0, %v353_v40  ;;  %v1151_v40 = vor.u32 %v1213_v36, %v1148_v37  ;;  %v1224_v36 = vld [vmem:[%s1812_s4 + $0x18] sm:$0xff] }
  0x72   : > { %678 = vmatpush.bf16.msra.mxu2 %v1151_v40 }
  0x80   : > { %1098 = vmatmul.msk.bf16.gmra.mxu0 %vm376_vm0, %v354_v46  ;;  %v1147_v46 = vor.u32 %v1211_v41, %v1144_v42  ;;  %v1223_v41 = vld [vmem:[%s1812_s4 + $0x10] sm:$0xff]  ;;  %v1222_v42 = vld [vmem:[%s1812_s4 + $0x8] sm:$0xff] }
  0x82   : > { %679 = vmatpush.bf16.msra.mxu2 %v1147_v46  ;;  %v1221_v46 = vld [vmem:[%s1812_s4] sm:$0xff] }
  0x90   : > { %1099 = vmatmul.msk.bf16.gmra.mxu0 %vm376_vm0, %v355_v49  ;;  %v1209_v49 = vld [vmem:[%s1532_s17 + $0x24] sm:$0xf] }
  0x9d   : > { %v410_v50 = vpop.f32.mrf.mxu0 }
  0x9e   : > { %v411_v53 = vadd.f32 %v1630_v51, %v410_v50  ;;  %v1140_v50 = vld [vmem:[%s1532_s17 + $0x28] sm:$0xf0] }
  0xa5   : > { %v412_v52 = vpop.f32.mrf.mxu0 }
  0xa6   : > { %v413_v54 = vadd.f32 %v1630_v51, %v412_v52 }
  0xa8   : > { %v514_v55 = vpack.c.bf16 %v413_v54, %v411_v53  ;;  %v1143_v53 = vor.u32 %v1209_v49, %v1140_v50 }
  0xaa   : > { %578 = vmatmul.bf16.vlgmr.msrb.gmra.mxu0 %v514_v55  ;;  %680 = vmatpush.bf16.msra.mxu2 %v1143_v53 }
  0xad   : > { %v415_v56 = vpop.f32.mrf.mxu0 }
  0xae   : > { %v416_v58 = vadd.f32 %v1630_v51, %v415_v56  ;;  %v1207_v56 = vld [vmem:[%s1532_s17 + $0x14] sm:$0xf] }
  0xb5   : > { %v417_v57 = vpop.f32.mrf.mxu0 }
  0xb6   : > { %v418_v59 = vadd.f32 %v1630_v51, %v417_v57  ;;  %v1136_v57 = vld [vmem:[%s1532_s17 + $0x18] sm:$0xf0] }
  0xb8   : > { %v515_v60 = vpack.c.bf16 %v418_v59, %v416_v58  ;;  %v1139_v59 = vor.u32 %v1207_v56, %v1136_v57 }
  0xba   : > { %583 = vmatmul.bf16.vlgmr.msra.gmra.mxu1 %v515_v60  ;;  %681 = vmatpush.bf16.msra.mxu2 %v1139_v59  ;;  %v1205_v60 = vld [vmem:[%s1532_s17 + $0x4] sm:$0xf] }
  0xbd   : > { %v420_v61 = vpop.f32.mrf.mxu0 }
  0xbe   : > { %v421_v63 = vadd.f32 %v1630_v51, %v420_v61  ;;  %v1132_v61 = vld [vmem:[%s1532_s17 + $0x8] sm:$0xf0]  ;;  %s963_s17 = scalar_lea.hbm %s1814_s6, %s1199_s13  ;;  %s1332_s13 = scalar_lea.hbm %s1814_s6, 512 }
  0xbf   : > { %s966_s25 = sshll.u32 %s963_s17, 4  ;;  %s967_s25 = int_to_ptr.hbm [resolvable:$true] %s966_s25 }
  0xc0   : > { %s1326_s20 = sshra.s32 %s967_s25, 4  ;;  %s1327_s20 = int_to_ptr.hbm [resolvable:$true] %s1326_s20 }
  0xc1   : > { %s1328_s29 = scalar_lea.hbm %s1327_s20, 128  ;;  %p1333_p4 = scmp.lt.s32.totalorder %s1327_s20, %s1814_s6 }
  0xc2   : > { %p1329_p0 = scmp.ne.s32.totalorder %s1327_s20, %s1328_s29  ;;  %p1334_p5 = scmp.lt.s32.totalorder %s1332_s13, %s1328_s29 }
  0xc4   : > { %p1330_p1 = pnand %p1329_p0, %p1496_p3  ;;  %p1335_p6 = por %p1334_p5, %p1333_p4 }
  0xc5   : > { %v422_v62 = vpop.f32.mrf.mxu0 }
  0xc6   : > { %v423_v0 = vadd.f32 %v1630_v51, %v422_v62  ;;  %p1331_p2 = pneg %p1330_p1 }
  0xc8   : > { %v516_v1 = vpack.c.bf16 %v423_v0, %v421_v63  ;;  %v1135_v63 = vor.u32 %v1205_v60, %v1132_v61  ;;  %p1336_p7 = pnand %p1335_p6, %p1331_p2 }
  0xca   : > { %588 = vmatmul.bf16.gmra.mxu1 %v516_v1  ;;  %682 = vmatpush.bf16.msra.mxu2 %v1135_v63 }
  0xcd   : > { %v425_v2 = vpop.f32.mrf.mxu0 }
  0xce   : > { %v426_v4 = vadd.f32 %v1630_v51, %v425_v2 }
  0xd5   : > { %v427_v3 = vpop.f32.mrf.mxu0 }
  0xd6   : > { %v428_v7 = vadd.f32 %v1630_v51, %v427_v3 }
  0xd8   : > { %v517_v8 = vpack.c.bf16 %v428_v7, %v426_v4 }
  0xda   : > { %593 = vmatmul.bf16.gmra.mxu1 %v517_v8 }
  0xdd   : > { %v430_v9 = vpop.f32.mrf.mxu0 }
  0xde   : > { %v431_v11 = vadd.f32 %v1630_v51, %v430_v9 }
  0xe5   : > { %v432_v10 = vpop.f32.mrf.mxu0 }
  0xe6   : > { %v433_v12 = vadd.f32 %v1630_v51, %v432_v10 }
  0xe8   : > { %v518_v15 = vpack.c.bf16 %v433_v12, %v431_v11 }
  0xea   : > { %598 = vmatmul.bf16.gmra.mxu1 %v518_v15 }
  0xed   : > { %v435_v16 = vpop.f32.mrf.mxu0 }
  0xee   : > { %v436_v28 = vadd.f32 %v1630_v51, %v435_v16 }
  0xf5   : > { %v437_v24 = vpop.f32.mrf.mxu0 }
  0xf6   : > { %v438_v29 = vadd.f32 %v1630_v51, %v437_v24 }
  0xf8   : > { %v519_v30 = vpack.c.bf16 %v438_v29, %v436_v28  ;;  %v1228_v28 = vld [vmem:[%s1812_s4 + $0x38] sm:$0xff] }
  0xf9   : > { %851 = vmatpush.bf16.msra.mxu3 %v1228_v28 }
  0xfa   : > { %603 = vmatmul.bf16.gmra.mxu1 %v519_v30  ;;  %v1227_v30 = vld [vmem:[%s1812_s4 + $0x30] sm:$0xff] }
  0xfd   : > { %v440_v43 = vpop.f32.mrf.mxu0  ;;  %852 = vmatpush.bf16.msra.mxu3 %v1227_v30 }
  0xfe   : > { %v441_v54 = vadd.f32 %v1630_v51, %v440_v43 }
 0x101   : > { %853 = vmatpush.bf16.msra.mxu3 %v1226_v31 }
 0x105   : > { %v442_v52 = vpop.f32.mrf.mxu0  ;;  %854 = vmatpush.bf16.msra.mxu3 %v1225_v35 }
 0x106   : > { %v443_v55 = vadd.f32 %v1630_v51, %v442_v52 }
 0x108   : > { %v520_v58 = vpack.c.bf16 %v443_v55, %v441_v54 }
 0x109   : > { %855 = vmatpush.bf16.msra.mxu3 %v1224_v36 }
 0x10a   : > { %608 = vmatmul.bf16.gmra.mxu1 %v520_v58 }
 0x10d   : > { %v445_v62 = vpop.f32.mrf.mxu0  ;;  %856 = vmatpush.bf16.msra.mxu3 %v1223_v41 }
 0x10e   : > { %v446_v1 = vadd.f32 %v1630_v51, %v445_v62 }
 0x111   : > { %857 = vmatpush.bf16.msra.mxu3 %v1222_v42 }
 0x115   : > { %v447_v0 = vpop.f32.mrf.mxu0  ;;  %858 = vmatpush.bf16.msra.mxu3 %v1221_v46 }
 0x116   : > { %v448_v2 = vadd.f32 %v1630_v51, %v447_v0 }
 0x118   : > { %v521_v3 = vpack.c.bf16 %v448_v2, %v446_v1 }
 0x11a   : > { %613 = vmatmul.bf16.gmra.mxu1 %v521_v3 }
 0x127   : > { %v579_v4 = vpop.f32.mrf.mxu0 }
 0x12f   : > { %v581_v7 = vpop.f32.mrf.mxu0 }
 0x130   : > { %v635_v8 = vpack.c.bf16 %v581_v7, %v579_v4 }
 0x132   : > { %683 = vmatmul.bf16.vlgmr.msra.gmra.mxu2 %v635_v8 }
 0x137   : > { %v584_v9 = vpop.f32.mrf.mxu1 }
 0x13f   : > { %v586_v10 = vpop.f32.mrf.mxu1 }
 0x140   : > { %v636_v11 = vpack.c.bf16 %v586_v10, %v584_v9 }
 0x142   : > { %688 = vmatmul.bf16.gmra.mxu2 %v636_v11 }
 0x147   : > { %v589_v12 = vpop.f32.mrf.mxu1 }
 0x14f   : > { %v591_v15 = vpop.f32.mrf.mxu1 }
 0x150   : > { %v637_v16 = vpack.c.bf16 %v591_v15, %v589_v12 }
 0x152   : > { %693 = vmatmul.bf16.gmra.mxu2 %v637_v16  ;;  %v1692_v16 = vld [vmem:[%s1813_s5] ss:$0 sm:$0xff] }
 0x157   : > { %v594_v17 = vpop.f32.mrf.mxu1 }
 0x15f   : > { %v596_v18 = vpop.f32.mrf.mxu1 }
 0x160   : > { %v638_v19 = vpack.c.bf16 %v596_v18, %v594_v17 }
 0x162   : > { %698 = vmatmul.bf16.gmra.mxu2 %v638_v19 }
 0x167   : > { %v599_v22 = vpop.f32.mrf.mxu1 }
 0x16f   : > { %v601_v51 = vpop.f32.mrf.mxu1 }
 0x170   : > { %v639_v23 = vpack.c.bf16 %v601_v51, %v599_v22 }
 0x172   : > { %703 = vmatmul.bf16.gmra.mxu2 %v639_v23 }
 0x177   : > { %v604_v24 = vpop.f32.mrf.mxu1 }
 0x17f   : > { %v606_v25 = vpop.f32.mrf.mxu1 }
 0x180   : > { %v640_v29 = vpack.c.bf16 %v606_v25, %v604_v24 }
 0x182   : > { %708 = vmatmul.bf16.gmra.mxu2 %v640_v29 }
 0x187   : > { %v609_v34 = vpop.f32.mrf.mxu1 }
 0x18f   : > { %v611_v37 = vpop.f32.mrf.mxu1 }
 0x190   : > { %v641_v40 = vpack.c.bf16 %v611_v37, %v609_v34 }
 0x192   : > { %713 = vmatmul.bf16.gmra.mxu2 %v641_v40 }
 0x197   : > { %v614_v43 = vpop.f32.mrf.mxu1 }
 0x19f   : > { %v616_v49 = vpop.f32.mrf.mxu1 }
 0x1a0   : > { %v642_v50 = vpack.c.bf16 %v616_v49, %v614_v43 }
 0x1a2   : > { %718 = vmatmul.bf16.gmra.mxu2 %v642_v50 }
 0x1b5   : > { %v684_v52 = vpop.f32.mrf.mxu2 }
 0x1bd   : > { %v686_v53 = vpop.f32.mrf.mxu2 }
 0x1be   : > { %v775_v54 = vpack.c.bf16 %v686_v53, %v684_v52 }
 0x1c0   : > { %859 = vmatmul.bf16.vlgmr.msra.gmra.mxu3 %v775_v54 }
 0x1c5   : > { %v689_v55 = vpop.f32.mrf.mxu2 }
 0x1cd   : > { %v691_v56 = vpop.f32.mrf.mxu2 }
 0x1ce   : > { %v776_v57 = vpack.c.bf16 %v691_v56, %v689_v55 }
 0x1d0   : > { %864 = vmatmul.bf16.gmra.mxu3 %v776_v57 }
 0x1d5   : > { %v694_v58 = vpop.f32.mrf.mxu2 }
 0x1dd   : > { %v696_v59 = vpop.f32.mrf.mxu2 }
 0x1de   : > { %v777_v60 = vpack.c.bf16 %v696_v59, %v694_v58 }
 0x1e0   : > { %869 = vmatmul.bf16.gmra.mxu3 %v777_v60 }
 0x1e5   : > { %v699_v61 = vpop.f32.mrf.mxu2 }
 0x1ed   : > { %v701_v62 = vpop.f32.mrf.mxu2 }
 0x1ee   : > { %v778_v63 = vpack.c.bf16 %v701_v62, %v699_v61 }
 0x1f0   : > { %874 = vmatmul.bf16.gmra.mxu3 %v778_v63 }
 0x1f5   : > { %v704_v0 = vpop.f32.mrf.mxu2 }
 0x1fd   : > { %v706_v1 = vpop.f32.mrf.mxu2 }
 0x1fe   : > { %v779_v2 = vpack.c.bf16 %v706_v1, %v704_v0 }
 0x200   : > { %879 = vmatmul.bf16.gmra.mxu3 %v779_v2 }
 0x205   : > { %v709_v3 = vpop.f32.mrf.mxu2 }
 0x20d   : > { %v711_v4 = vpop.f32.mrf.mxu2 }
 0x20e   : > { %v780_v7 = vpack.c.bf16 %v711_v4, %v709_v3 }
 0x210   : > { %884 = vmatmul.bf16.gmra.mxu3 %v780_v7 }
 0x215   : > { %v714_v8 = vpop.f32.mrf.mxu2 }
 0x21d   : > { %v716_v9 = vpop.f32.mrf.mxu2 }
 0x21e   : > { %v781_v10 = vpack.c.bf16 %v716_v9, %v714_v8 }
 0x220   : > { %889 = vmatmul.bf16.gmra.mxu3 %v781_v10 }
 0x225   : > { %v719_v11 = vpop.f32.mrf.mxu2 }
 0x22d   : > { %v721_v12 = vpop.f32.mrf.mxu2 }
 0x22e   : > { %v782_v15 = vpack.c.bf16 %v721_v12, %v719_v11 }
 0x230   : > { %894 = vmatmul.bf16.gmra.mxu3 %v782_v15 }
 0x243   : > { %v860_v17 = vpop.f32.mrf.mxu3 }
 0x244   : > { %v861_v18 = vadd.f32 %v1692_v16, %v860_v17 }
 0x246   : > { %v916_v19 = vadd.f32 %v861_v18, %v1542_v5 }
 0x248   : > { %933 = vst.msk [vmem:[%s1698_s30] sm:$0xff] %vm376_vm0, %v916_v19 }
 0x24b   : > { %v862_v22 = vpop.f32.mrf.mxu3 }
 0x24c   : > { %v863_v51 = vadd.f32 %v1692_v16, %v862_v22 }
 0x24e   : > { %v917_v23 = vadd.f32 %v863_v51, %v1545_v6 }
 0x250   : > { %934 = vst.msk [vmem:[%s1698_s30 + $0x8] sm:$0xff] %vm376_vm0, %v917_v23 }
 0x253   : > { %v865_v24 = vpop.f32.mrf.mxu3 }
 0x254   : > { %v866_v5 = vadd.f32 %v1692_v16, %v865_v24 }
 0x256   : > { %v918_v25 = vadd.f32 %v866_v5, %v1555_v13 }
 0x258   : > { %935 = vst.msk [vmem:[%s1698_s30 + $0x10] sm:$0xff] %vm376_vm0, %v918_v25 }
 0x25b   : > { %v867_v28 = vpop.f32.mrf.mxu3 }
 0x25c   : > { %v868_v29 = vadd.f32 %v1692_v16, %v867_v28 }
 0x25e   : > { %v919_v30 = vadd.f32 %v868_v29, %v1558_v14 }
 0x260   : > { %936 = vst.msk [vmem:[%s1698_s30 + $0x18] sm:$0xff] %vm376_vm0, %v919_v30 }
 0x263   : > { %v870_v6 = vpop.f32.mrf.mxu3 }
 0x264   : > { %v871_v31 = vadd.f32 %v1692_v16, %v870_v6 }
 0x266   : > { %v920_v34 = vadd.f32 %v871_v31, %v1566_v20 }
 0x268   : > { %937 = vst.msk [vmem:[%s1698_s30 + $0x20] sm:$0xff] %vm376_vm0, %v920_v34 }
 0x26b   : > { %v872_v13 = vpop.f32.mrf.mxu3 }
 0x26c   : > { %v873_v35 = vadd.f32 %v1692_v16, %v872_v13 }
 0x26e   : > { %v921_v36 = vadd.f32 %v873_v35, %v1569_v21 }
 0x270   : > { %938 = vst.msk [vmem:[%s1698_s30 + $0x28] sm:$0xff] %vm376_vm0, %v921_v36 }
 0x273   : > { %v875_v14 = vpop.f32.mrf.mxu3 }
 0x274   : > { %v876_v37 = vadd.f32 %v1692_v16, %v875_v14 }
 0x276   : > { %v922_v40 = vadd.f32 %v876_v37, %v1577_v26 }
 0x278   : > { %939 = vst.msk [vmem:[%s1698_s30 + $0x30] sm:$0xff] %vm376_vm0, %v922_v40 }
 0x27b   : > { %v877_v20 = vpop.f32.mrf.mxu3 }
 0x27c   : > { %v878_v41 = vadd.f32 %v1692_v16, %v877_v20 }
 0x27e   : > { %v923_v42 = vadd.f32 %v878_v41, %v1580_v27 }
 0x280   : > { %940 = vst.msk [vmem:[%s1698_s30 + $0x38] sm:$0xff] %vm376_vm0, %v923_v42 }
 0x283   : > { %v880_v21 = vpop.f32.mrf.mxu3 }
 0x284   : > { %v881_v43 = vadd.f32 %v1692_v16, %v880_v21 }
 0x286   : > { %v924_v46 = vadd.f32 %v881_v43, %v1588_v32 }
 0x288   : > { %941 = vst.msk [vmem:[%s1698_s30 + $0x40] sm:$0xff] %vm376_vm0, %v924_v46 }
 0x28b   : > { %v882_v26 = vpop.f32.mrf.mxu3 }
 0x28c   : > { %v883_v49 = vadd.f32 %v1692_v16, %v882_v26 }
 0x28e   : > { %v925_v50 = vadd.f32 %v883_v49, %v1591_v33 }
 0x290   : > { %942 = vst.msk [vmem:[%s1698_s30 + $0x48] sm:$0xff] %vm376_vm0, %v925_v50 }
 0x293   : > { %v885_v27 = vpop.f32.mrf.mxu3 }
 0x294   : > { %v886_v52 = vadd.f32 %v1692_v16, %v885_v27 }
 0x296   : > { %v926_v53 = vadd.f32 %v886_v52, %v1599_v38 }
 0x298   : > { %943 = vst.msk [vmem:[%s1698_s30 + $0x50] sm:$0xff] %vm376_vm0, %v926_v53 }
 0x29b   : > { %v887_v32 = vpop.f32.mrf.mxu3 }
 0x29c   : > { %v888_v54 = vadd.f32 %v1692_v16, %v887_v32 }
 0x29e   : > { %v927_v55 = vadd.f32 %v888_v54, %v1602_v39 }
 0x2a0   : > { %944 = vst.msk [vmem:[%s1698_s30 + $0x58] sm:$0xff] %vm376_vm0, %v927_v55 }
 0x2a3   : > { %v890_v33 = vpop.f32.mrf.mxu3 }
 0x2a4   : > { %v891_v56 = vadd.f32 %v1692_v16, %v890_v33 }
 0x2a6   : > { %v928_v57 = vadd.f32 %v891_v56, %v1610_v44 }
 0x2a8   : > { %945 = vst.msk [vmem:[%s1698_s30 + $0x60] sm:$0xff] %vm376_vm0, %v928_v57 }
 0x2ab   : > { %v892_v58 = vpop.f32.mrf.mxu3 }
 0x2ac   : > { %v893_v38 = vadd.f32 %v1692_v16, %v892_v58 }
 0x2ae   : > { %v929_v59 = vadd.f32 %v893_v38, %v1613_v45 }
 0x2b0   : > { %946 = vst.msk [vmem:[%s1698_s30 + $0x68] sm:$0xff] %vm376_vm0, %v929_v59 }
 0x2b3   : > { %v895_v39 = vpop.f32.mrf.mxu3 }
 0x2b4   : > { %v896_v60 = vadd.f32 %v1692_v16, %v895_v39 }
 0x2b6   : > { %v930_v61 = vadd.f32 %v896_v60, %v1619_v47 }
 0x2b8   : > { %947 = vst.msk [vmem:[%s1698_s30 + $0x70] sm:$0xff] %vm376_vm0, %v930_v61 }
 0x2bb   : > { %v897_v44 = vpop.f32.mrf.mxu3 }
 0x2bc   : > { %v898_v45 = vadd.f32 %v1692_v16, %v897_v44 }
 0x2be   : > { %v931_v62 = vadd.f32 %v898_v45, %v1622_v48 }
 0x2c0   : > { %948 = vst.msk [vmem:[%s1698_s30 + $0x78] sm:$0xff] %vm376_vm0, %v931_v62 }
 0x2c1   : > { %1339 = shalt.err (!%p1336_p7)
}
 0x2c2   : > { %s1408_s24 = smov 128   ;;  %s1409_s30 = smov 8  }
 0x2c3   : > { %1237 = dma.vmem_to_hbm [thread:$0]  (%p1496_p3), %s965_s19, 2048, %s967_s25, %s950_s18, %s1408_s24, %s1408_s24, %s1409_s30  }
 0x2c4 PF: > { %p1243_p9 = scmp.ge.s32.totalorder %s1406_s28, 2  ;;  %s981_s17 = sand.u32 1, %s1378_s21  }
 0x2c5   : > { %s982_s9 = scalar_lea.sflag [#allocation5], %s981_s17 }
 0x2c6   : > { %p1240_p10 = pnand %p1243_p9, %p1505_p8 }
 0x2c8   : > { %p1241_p11 = pneg %p1240_p10 }
 0x2ca   : > { %1373 = dma.done.wait (%p1241_p11), %s982_s9, 2048  }
 0x2cb   : > { %1375 = vsyncadd (%p1241_p11), %s982_s9, 4294965248  ;;  %s19_s28 = sadd.s32 1, %s1406_s28   ;;  %s1817_s21 = smov %s1382_s22 }
 0x2cc   : > { %p16_p12 = scmp.ge.s32.totalorder %s19_s28, 6   ;;  %s1818_s22 = smov %s1386_s23 }
 0x2cd   : > { %s1819_s23 = smov %s1514_s15  ;;  %s1820_s24 = smov %s1398_s26 }
 0x2ce   : > { %s1821_s25 = smov %s1402_s27  ;;  %s1822_s26 = smov %s1825_s7 }
 0x2cf   : > { %s1823_s27 = smov %s1829_s8  ;;  %18 = sbr.rel (!%p16_p12) target bundleno = 5 (0x5), region = 90 }
 0x2d4   :  { %988 = vsyncpa [#allocation5], 1 }
 0x2d5   :  { %990 = vsyncpa [#allocation5 + $0x1], 1 }

</bundles_post_ra>
